<compile_context>
chip_gen: v6e
topology: v6e:2x2x1
jax: 0.10.0
libtpu: 0.0.40
codegen_flags: <defaults>
</compile_context>

<pallas_src>
import jax
import jax.numpy as jnp
from jax.experimental import pallas as pl
from jax.experimental.pallas import tpu as pltpu

_NEG_INF = float(-1e30)   # finite "-inf": avoids inf-inf NaN corner cases


def _vmem_budget_and_limit():
    """Generation-aware scoped-VMEM limit and input-tile budget."""
    try:
        cap = int(pltpu.get_tpu_info().vmem_capacity_bytes)
    except Exception:
        cap = 64 * 1024 * 1024          # conservative fallback: v7x per-TC VMEM
    limit = (cap * 3) // 4              # 96 MiB on v5e/v6e, 48 MiB on v7x
    budget = max(limit - (6 << 20), limit // 2)   # compiler / internal headroom
    return budget, limit


def _auto_blocks(B, T, H, dtype, budget):
    """Pick (block_b, block_t) so the padded, double-buffered tile + f32 working
    set fits the budget, preferring large contiguous time slabs."""
    itemsize = jnp.dtype(dtype).itemsize
    sub = max(8, 32 // itemsize)           # sublane tile: 8 f32, 16 bf16, 32 int8
    lanes_h = pl.cdiv(H, 128) * 128        # H rounds up to the 128-lane tile in VMEM

    def per_row_bytes(bt):
        btp = pl.cdiv(bt, sub) * sub                        # layout-padded block_t
        tile = 2 * btp * lanes_h * itemsize                  # double-buffered input slab
        f32_row = 4 * btp * 4                                 # scores/probs/temporaries
        fixed = 4 * lanes_h + 2 * lanes_h * itemsize + 64     # f32 acc + dbl-buffered out + stats
        return tile + f32_row + fixed

    # Contiguity floor: each DMA'd slab is block_t*H*itemsize contiguous bytes
    # (stride T*H between batch rows); keep it >= ~8 KiB, shrink block_b first.
    min_bt = min(T, pl.cdiv(max(sub, pl.cdiv(8 * 1024, H * itemsize)), sub) * sub)

    block_t = T
    while block_t > min_bt and per_row_bytes(block_t) > budget:
        block_t = max(min_bt, pl.cdiv(block_t, 2 * sub) * sub)   # ~halve, sublane-aligned

    block_b = max(1, min(B, budget // per_row_bytes(block_t)))
    return int(block_b), int(block_t)


def _make_kernel(t_valid, block_t, t_pad):
    needs_time_mask = (t_pad != t_valid)   # static: only when T was padded

    def kernel(x_ref, w_ref, o_ref, m_scr, d_scr, acc_scr):
        # x_ref:   (block_b, block_t, H)  input tile (input dtype, never cast whole)
        # w_ref:   (1, H)                 Linear(H, 1) weight, lane-dense, input dtype
        # o_ref:   (block_b, H)           pooled output (written on last time tile)
        # m_scr:   (block_b, 1) f32       running max       (online softmax)
        # d_scr:   (block_b, 1) f32       running denominator
        # acc_scr: (block_b, H) f32       running weighted sum
        t = pl.program_id(1)

        @pl.when(t == 0)
        def _init():
            m_scr[...] = jnp.full_like(m_scr, _NEG_INF)
            d_scr[...] = jnp.zeros_like(d_scr)
            acc_scr[...] = jnp.zeros_like(acc_scr)

        x_tile = x_ref[...]                 # input dtype — no full-tile f32 copy
        w_row = w_ref[...]                  # (1, H), input dtype

        # Scores on the VPU (input-dtype multiply), f32 accumulation for the
        # lane reduce; (block_b, block_t) is lane-dense over time.
        # The scalar Linear bias is omitted: softmax(s + c) == softmax(s).
        s = jnp.sum((x_tile * w_row).astype(jnp.float32), axis=-1)

        if needs_time_mask:
            pos = t * block_t + jax.lax.broadcasted_iota(jnp.int32, s.shape, 1)
            s = jnp.where(pos < t_valid, s, _NEG_INF)

        # Online-softmax update (f32 stats only).
        m_prev = m_scr[...]                                               # (bb, 1)
        m_new = jnp.maximum(m_prev, jnp.max(s, axis=-1, keepdims=True))   # (bb, 1)
        alpha = jnp.exp(m_prev - m_new)                                   # (bb, 1)
        p = jnp.exp(s - m_new)                                            # (bb, bt)

        d_scr[...] = alpha * d_scr[...] + jnp.sum(p, axis=-1, keepdims=True)

        # Weighted partial sum on the MXU with operands in the INPUT dtype
        # (bf16 fast path on bf16 inputs), f32 accumulation:
        # (bb, 1, bt) @ (bb, bt, H) -> (bb, 1, H)
        part = jnp.einsum("bqt,bth->bqh",
                          p[:, None, :].astype(x_tile.dtype), x_tile,
                          preferred_element_type=jnp.float32)[:, 0, :]
        acc_scr[...] = alpha * acc_scr[...] + part
        m_scr[...] = m_new

        @pl.when(t == pl.num_programs(1) - 1)
        def _finalize():
            # Exact divide: once per batch tile, fully hidden under DMA.
            o_ref[...] = (acc_scr[...] / d_scr[...]).astype(o_ref.dtype)

    return kernel


def self_attention_pooling(batch_rep, w, b=None, *, block_b=None, block_t=None):
    """batch_rep: (B, T, H); w: nn.Linear(H,1) weight in any of (1,H)/(H,1)/(H,);
    b: (1,) bias, accepted for API parity but a mathematical no-op under softmax.
    Returns (B, H) in batch_rep.dtype."""
    del b  # softmax(s + c) == softmax(s): the scalar bias cannot change the output
    B, T, H = batch_rep.shape
    x_dtype = batch_rep.dtype
    w2 = jnp.asarray(w).reshape(1, H).astype(x_dtype)

    itemsize = jnp.dtype(x_dtype).itemsize
    sub = max(8, 32 // itemsize)
    budget, vmem_limit = _vmem_budget_and_limit()

    user_bb = block_b is not None
    auto_bb, auto_bt = _auto_blocks(B, T, H, x_dtype, budget)
    block_b = int(min(B, auto_bb if block_b is None else block_b))
    block_t = int(min(T, auto_bt if block_t is None else block_t))

    # Megacore: keep >= 2 batch tiles so both v7x TensorCores get work
    # (batch is the only "parallel" grid axis; ~0.35 us/step extra elsewhere).
    if not user_bb and B >= 16:
        block_b = min(block_b, max(8, (pl.cdiv(B, 2) // 8) * 8))

    # Output BlockSpec is (block_b, H): when the batch axis is actually tiled,
    # keep block_b sublane-aligned for dense, unmasked stores (and lowering).
    if block_b < B:
        block_b = (block_b // 8) * 8 if block_b >= 8 else min(8, B)
    block_b = max(1, min(block_b, B))

    # Time tiles must be sublane-aligned when the time axis is actually tiled.
    if pl.cdiv(T, block_t) > 1 and block_t % sub != 0:
        block_t = pl.cdiv(block_t, sub) * sub

    grid_b = pl.cdiv(B, block_b)
    grid_t = pl.cdiv(T, block_t)
    B_pad, T_pad = grid_b * block_b, grid_t * block_t

    x = batch_rep
    if (B_pad, T_pad) != (B, T):
        x = jnp.pad(x, ((0, B_pad - B), (0, T_pad - T), (0, 0)))  # kernel masks padded T

    out = pl.pallas_call(
        _make_kernel(t_valid=T, block_t=block_t, t_pad=T_pad),
        out_shape=jax.ShapeDtypeStruct((B_pad, H), x_dtype),
        grid_spec=pltpu.PrefetchScalarGridSpec(
            num_scalar_prefetch=0,
            grid=(grid_b, grid_t),                    # time (reduction) axis last
            in_specs=[
                pl.BlockSpec((block_b, block_t, H), lambda i, t: (i, t, 0)),
                pl.BlockSpec((1, H), lambda i, t: (0, 0)),
            ],
            out_specs=pl.BlockSpec((block_b, H), lambda i, t: (i, 0)),
            scratch_shapes=[
                pltpu.VMEM((block_b, 1), jnp.float32),   # running max
                pltpu.VMEM((block_b, 1), jnp.float32),   # running denominator
                pltpu.VMEM((block_b, H), jnp.float32),   # running weighted sum
            ],
        ),
        compiler_params=pltpu.CompilerParams(
            dimension_semantics=("parallel", "arbitrary"),
            vmem_limit_bytes=int(vmem_limit),
        ),
    )(x, w2)
    return out[:B]


def self_attention_pooling_ref(batch_rep, w, b):
    """Pure-JAX reference mirroring the PyTorch forward exactly (bias included)."""
    scores = jnp.einsum("bth,h->bt", batch_rep, jnp.asarray(w).reshape(-1)) + b[0]
    att = jax.nn.softmax(scores, axis=1)[..., None]
    return jnp.sum(batch_rep * att, axis=1)


if __name__ == "__main__":
    key = jax.random.PRNGKey(0)
    kx, kw, kb, kx2 = jax.random.split(key, 4)

    # Case 1: small shapes matching the module (batch=2, seq=8, hidden=32).
    B, T, H = 2, 8, 32
    x = jax.random.normal(kx, (B, T, H), dtype=jnp.float32)
    w = jax.random.normal(kw, (1, H), dtype=jnp.float32) * 0.1   # nn.Linear(H, 1).weight
    b = jax.random.normal(kb, (1,), dtype=jnp.float32) * 0.1     # nn.Linear(H, 1).bias

    out = jax.block_until_ready(self_attention_pooling(x, w, b))
    ref = jax.block_until_ready(self_attention_pooling_ref(x, w, b))
    assert out.shape == (B, H), out.shape
    assert jnp.allclose(out, ref, atol=1e-4, rtol=1e-4), float(jnp.max(jnp.abs(out - ref)))

    # Case 2: exercises batch tiling, ragged batch/time padding, and the
    # time-tiled online-softmax path.
    B2, T2 = 12, 20
    x2 = jax.random.normal(kx2, (B2, T2, H), dtype=jnp.float32)
    out2 = jax.block_until_ready(self_attention_pooling(x2, w, b, block_b=8, block_t=8))
    ref2 = jax.block_until_ready(self_attention_pooling_ref(x2, w, b))
    assert out2.shape == (B2, H), out2.shape
    assert jnp.allclose(out2, ref2, atol=1e-4, rtol=1e-4), float(jnp.max(jnp.abs(out2 - ref2)))

    print("KERNEL_OK")
</pallas_src>

<mosaic_0001>
module attributes {stable_mosaic.version = 11 : i64} {
  func.func @kernel(%arg0: i32, %arg1: i32, %arg2: memref<2x8x32xf32, #tpu.memory_space<vmem>>, %arg3: memref<1x32xf32, #tpu.memory_space<vmem>>, %arg4: memref<2x32xf32, #tpu.memory_space<vmem>>, %arg5: memref<2x1xf32, #tpu.memory_space<vmem>>, %arg6: memref<2x1xf32, #tpu.memory_space<vmem>>, %arg7: memref<2x32xf32, #tpu.memory_space<vmem>>) attributes {dimension_semantics = [#tpu.dimension_semantics<parallel>, #tpu.dimension_semantics<arbitrary>], iteration_bounds = array<i64: 1, 1>, scalar_prefetch = 0 : i64, scratch_operands = 3 : i64, tpu.core_type = #tpu.core_type<tc>, window_params = [{transform_indices = @transform_0, window_bounds = array<i64: 2, 8, 32>}, {pipeline_mode = #tpu.pipeline_mode<synchronous>, transform_indices = @transform_1, window_bounds = array<i64: 1, 32>}, {transform_indices = @transform_2, window_bounds = array<i64: 2, 32>}]} {
    %c0_i32 = arith.constant 0 : i32
    %0 = arith.cmpi eq, %arg1, %c0_i32 : i32
    %1 = arith.extui %0 : i1 to i32
    %c0_i32_0 = arith.constant 0 : i32
    %2 = arith.cmpi ne, %1, %c0_i32_0 : i32
    scf.if %2 {
      %cst_22 = arith.constant -1.000000e+30 : f32
      %36 = vector.broadcast %cst_22 : f32 to vector<2x1xf32>
      %c0_23 = arith.constant 0 : index
      %c0_24 = arith.constant 0 : index
      %37 = vector.load %arg5[%c0_23, %c0_24] : memref<2x1xf32, #tpu.memory_space<vmem>>, vector<2x1xf32>
      tpu.vector_store %arg5[%c0_23, %c0_24], %36 {strides = array<i32>} : memref<2x1xf32, #tpu.memory_space<vmem>>, vector<2x1xf32>,
      %cst_25 = arith.constant 0.000000e+00 : f32
      %38 = vector.broadcast %cst_25 : f32 to vector<2x1xf32>
      %c0_26 = arith.constant 0 : index
      %c0_27 = arith.constant 0 : index
      %39 = vector.load %arg6[%c0_26, %c0_27] : memref<2x1xf32, #tpu.memory_space<vmem>>, vector<2x1xf32>
      tpu.vector_store %arg6[%c0_26, %c0_27], %38 {strides = array<i32>} : memref<2x1xf32, #tpu.memory_space<vmem>>, vector<2x1xf32>,
      %cst_28 = arith.constant 0.000000e+00 : f32
      %40 = vector.broadcast %cst_28 : f32 to vector<2x32xf32>
      %c0_29 = arith.constant 0 : index
      %c0_30 = arith.constant 0 : index
      %41 = vector.load %arg7[%c0_29, %c0_30] : memref<2x32xf32, #tpu.memory_space<vmem>>, vector<2x32xf32>
      tpu.vector_store %arg7[%c0_29, %c0_30], %40 {strides = array<i32>} : memref<2x32xf32, #tpu.memory_space<vmem>>, vector<2x32xf32>,
    } else {
    }
    %c0 = arith.constant 0 : index
    %c0_1 = arith.constant 0 : index
    %c0_2 = arith.constant 0 : index
    %3 = vector.load %arg2[%c0, %c0_1, %c0_2] : memref<2x8x32xf32, #tpu.memory_space<vmem>>, vector<2x8x32xf32>
    %c0_3 = arith.constant 0 : index
    %c0_4 = arith.constant 0 : index
    %4 = vector.load %arg3[%c0_3, %c0_4] : memref<1x32xf32, #tpu.memory_space<vmem>>, vector<1x32xf32>
    %5 = vector.shape_cast %4 : vector<1x32xf32> to vector<1x1x32xf32>
    %6 = vector.broadcast %5 : vector<1x1x32xf32> to vector<2x8x32xf32>
    %7 = arith.mulf %3, %6 : vector<2x8x32xf32>
    %cst = arith.constant dense<0.000000e+00> : vector<2x8xf32>
    %8 = vector.multi_reduction <add>, %7, %cst [2] : vector<2x8x32xf32> to vector<2x8xf32>
    %c0_5 = arith.constant 0 : index
    %c0_6 = arith.constant 0 : index
    %9 = vector.load %arg5[%c0_5, %c0_6] : memref<2x1xf32, #tpu.memory_space<vmem>>, vector<2x1xf32>
    %cst_7 = arith.constant dense<0xFF800000> : vector<2xf32>
    %10 = vector.multi_reduction <maximumf>, %8, %cst_7 [1] : vector<2x8xf32> to vector<2xf32>
    %11 = vector.shape_cast %10 : vector<2xf32> to vector<2x1xf32>
    %12 = arith.maximumf %9, %11 : vector<2x1xf32>
    %13 = arith.subf %9, %12 : vector<2x1xf32>
    %14 = math.exp %13 : vector<2x1xf32>
    %15 = vector.broadcast %12 : vector<2x1xf32> to vector<2x8xf32>
    %16 = arith.subf %8, %15 : vector<2x8xf32>
    %17 = math.exp %16 : vector<2x8xf32>
    %c0_8 = arith.constant 0 : index
    %c0_9 = arith.constant 0 : index
    %18 = vector.load %arg6[%c0_8, %c0_9] : memref<2x1xf32, #tpu.memory_space<vmem>>, vector<2x1xf32>
    %19 = arith.mulf %14, %18 : vector<2x1xf32>
    %cst_10 = arith.constant dense<0.000000e+00> : vector<2xf32>
    %20 = vector.multi_reduction <add>, %17, %cst_10 [1] : vector<2x8xf32> to vector<2xf32>
    %21 = vector.shape_cast %20 : vector<2xf32> to vector<2x1xf32>
    %22 = arith.addf %19, %21 : vector<2x1xf32>
    %c0_11 = arith.constant 0 : index
    %c0_12 = arith.constant 0 : index
    %23 = vector.load %arg6[%c0_11, %c0_12] : memref<2x1xf32, #tpu.memory_space<vmem>>, vector<2x1xf32>
    tpu.vector_store %arg6[%c0_11, %c0_12], %22 {strides = array<i32>} : memref<2x1xf32, #tpu.memory_space<vmem>>, vector<2x1xf32>,
    %24 = vector.shape_cast %17 : vector<2x8xf32> to vector<2x1x8xf32>
    "tpu.trace_start"() <{level = 10 : i32, message = "bqt,bth->bqh"}> : () -> ()
    %cst_13 = arith.constant dense<0.000000e+00> : vector<2x1x32xf32>
    %25 = tpu.matmul %24, %3, %cst_13 {dimension_numbers = #tpu.dot_dimension_numbers<[2], [1], [1], [2], [0, 0, 0, 1, 1, 2], [0], [0]>} : vector<2x1x8xf32>, vector<2x8x32xf32>, vector<2x1x32xf32> -> vector<2x1x32xf32>
    "tpu.trace_stop"() : () -> ()
    %26 = vector.shape_cast %25 : vector<2x1x32xf32> to vector<2x32xf32>
    %c0_14 = arith.constant 0 : index
    %c0_15 = arith.constant 0 : index
    %27 = vector.load %arg7[%c0_14, %c0_15] : memref<2x32xf32, #tpu.memory_space<vmem>>, vector<2x32xf32>
    %28 = vector.broadcast %14 : vector<2x1xf32> to vector<2x32xf32>
    %29 = arith.mulf %28, %27 : vector<2x32xf32>
    %30 = arith.addf %29, %26 : vector<2x32xf32>
    %c0_16 = arith.constant 0 : index
    %c0_17 = arith.constant 0 : index
    %31 = vector.load %arg7[%c0_16, %c0_17] : memref<2x32xf32, #tpu.memory_space<vmem>>, vector<2x32xf32>
    tpu.vector_store %arg7[%c0_16, %c0_17], %30 {strides = array<i32>} : memref<2x32xf32, #tpu.memory_space<vmem>>, vector<2x32xf32>,
    %c0_18 = arith.constant 0 : index
    %c0_19 = arith.constant 0 : index
    %32 = vector.load %arg5[%c0_18, %c0_19] : memref<2x1xf32, #tpu.memory_space<vmem>>, vector<2x1xf32>
    tpu.vector_store %arg5[%c0_18, %c0_19], %12 {strides = array<i32>} : memref<2x1xf32, #tpu.memory_space<vmem>>, vector<2x1xf32>,
    %c0_i32_20 = arith.constant 0 : i32
    %33 = arith.cmpi eq, %arg1, %c0_i32_20 : i32
    %34 = arith.extui %33 : i1 to i32
    %c0_i32_21 = arith.constant 0 : i32
    %35 = arith.cmpi ne, %34, %c0_i32_21 : i32
    scf.if %35 {
      %c0_22 = arith.constant 0 : index
      %c0_23 = arith.constant 0 : index
      %36 = vector.load %arg7[%c0_22, %c0_23] : memref<2x32xf32, #tpu.memory_space<vmem>>, vector<2x32xf32>
      %c0_24 = arith.constant 0 : index
      %c0_25 = arith.constant 0 : index
      %37 = vector.load %arg6[%c0_24, %c0_25] : memref<2x1xf32, #tpu.memory_space<vmem>>, vector<2x1xf32>
      %38 = vector.broadcast %37 : vector<2x1xf32> to vector<2x32xf32>
      %39 = arith.divf %36, %38 : vector<2x32xf32>
      %c0_26 = arith.constant 0 : index
      %c0_27 = arith.constant 0 : index
      %40 = vector.load %arg4[%c0_26, %c0_27] : memref<2x32xf32, #tpu.memory_space<vmem>>, vector<2x32xf32>
      tpu.vector_store %arg4[%c0_26, %c0_27], %39 {strides = array<i32>} : memref<2x32xf32, #tpu.memory_space<vmem>>, vector<2x32xf32>,
    } else {
    }
    return
  }
  func.func @transform_0(%arg0: i32, %arg1: i32) -> (i32, i32, i32) {
    %c0_i32 = arith.constant 0 : i32
    %c0_i32_0 = arith.constant 0 : i32
    return %arg0, %arg1, %c0_i32 : i32, i32, i32
  }
  func.func @transform_1(%arg0: i32, %arg1: i32) -> (i32, i32) {
    %c0_i32 = arith.constant 0 : i32
    %c0_i32_0 = arith.constant 0 : i32
    %c0_i32_1 = arith.constant 0 : i32
    return %c0_i32, %c0_i32_0 : i32, i32
  }
  func.func @transform_2(%arg0: i32, %arg1: i32) -> (i32, i32) {
    %c0_i32 = arith.constant 0 : i32
    %c0_i32_0 = arith.constant 0 : i32
    return %arg0, %c0_i32 : i32, i32
  }
}

</mosaic_0001>

<bundles_post_ra>
// kernel: tpu_custom_call.1
= control target key start
LH: loop header
LB: loop body
LE: loop exit
PB: predicated region body
PF: predicated region fallthrough
CT: control target
= control target key end

     0   :  { %7 = vsyncpa [#allocation6], 0  ;;  %s435_s0 = inlined_call_operand.hbm [shape: f32[2,8,32], index: 0, kind: input, shape index: {}]   ;;  %s436_s1 = inlined_call_operand.vmem [shape: f32[1,32], index: 1, kind: input, shape index: {}]   ;;  %s437_s2 = inlined_call_operand.hbm [shape: f32[2,32], index: 2, kind: output, shape index: {}]  }
   0x1   :  { %8 = vsyncpa [#allocation7], 0  ;;  %s391_s9 = smov [#allocation5]  }
   0x2   :  { %s14_s10 = sshll.u32 %s391_s9, 4  ;;  %s15_s10 = int_to_ptr.vmem [resolvable:$true] %s14_s10 }
   0x3   :  { %s355_s11 = scalar_lea.vmem %s15_s10, 256  ;;  %p360_p1 = scmp.lt.s32.totalorder %s15_s10, %s15_s10 }
   0x4   :  { %p356_p0 = scmp.ne.s32.totalorder %s15_s10, %s355_s11  ;;  %p361_p2 = scmp.lt.s32.totalorder %s355_s11, %s355_s11 }
   0x6   :  { %p362_p3 = por %p361_p2, %p360_p1 }
   0x8   :  { %p363_p4 = pnand %p362_p3, %p356_p0 }
   0xa   :  { %366 = shalt.err (!%p363_p4)
}
   0xb   :  { %s392_s12 = smov 128   ;;  %s393_s13 = smov 8  }
   0xc   :  { %20 = dma.hbm_to_vmem [thread:$0]  %s435_s0, 256, %s15_s10, [#allocation6], %s392_s12, %s392_s12, %s393_s13  }
   0xd   :  { %387 = dma.done.wait [#allocation6], 256  }
   0xe   :  { %388 = vsyncadd [#allocation6], 4294967040  ;;  %v35_v0 = vld [vmem:[#allocation5] sm:$0xff]  ;;  %v312_v1 = vld [vmem:[%s436_s1] ss:$0 sm:$0xff]  ;;  %vm46_vm0 = vcmask 261120   ;;  %v56_v8 = vlaneseq }
   0xf   :  { %v36_v2 = vld [vmem:[#allocation5 + $0x8] sm:$0xff]  ;;  %v44_v3 = vmul.f32 %v312_v1, %v35_v0  ;;  %vm30_vm1 = vcmask 1024   ;;  %v394_v7 = vmov -1e+30   ;;  %vm66_vm2 = vcmask 1041409   ;;  %s398_s0 = smov [#allocation8]  }
  0x10   :  { %v45_v4 = vmul.f32 %v312_v1, %v36_v2  ;;  %31 = vst.msk [vmem:[#allocation2] sm:$0x3] %vm30_vm1, %v394_v7  ;;  %v57_v9 = vand.u32 127, %v56_v8  ;;  %v59_v10 = vshrl.u32 %v56_v8, 7  ;;  %vm69_vm3 = vcmask 58368   ;;  %s303_s1 = sshll.u32 %s398_s0, 4  ;;  %s304_s1 = int_to_ptr.vmem [resolvable:$true] %s303_s1 }
  0x11   :  { %v47_v5 = vsel %vm46_vm0, %v44_v3, 0.0  ;;  %v395_v18 = vmov 0   ;;  %v396_v19 = vmov 0.0   ;;  %vm397_vm4 = vmmov 0   ;;  %s367_s18 = scalar_lea.vmem %s304_s1, 32  ;;  %p372_p6 = scmp.lt.s32.totalorder %s304_s1, %s304_s1 }
  0x12   :  { %48 = vadd.xlane.f32.xlu0 %v47_v5  ;;  %v50_v6 = vsel %vm46_vm0, %v45_v4, 0.0  ;;  %v60_v12 = vsub.s32 %v57_v9, %v59_v10  ;;  %337 = vset.pattern.permute.xlu1 %v395_v18  ;;  %32 = vst.msk [vmem:[#allocation3] sm:$0x3] %vm30_vm1, %v396_v19  ;;  %v83_v24 = vsub.s32 0, %v59_v10  ;;  %v87_v25 = vsub.s32 1, %v59_v10  ;;  %p368_p5 = scmp.ne.s32.totalorder %s304_s1, %s367_s18  ;;  %p373_p7 = scmp.lt.s32.totalorder %s367_s18, %s367_s18 }
  0x13   :  { %338 = vset.pattern.permute.xlu0 %v395_v18  ;;  %319 = vmatprep.subr.mxu0 %v396_v19  ;;  %vm123_vm5 = vcmask 64512   ;;  %vm33_vm6 = vcmask 254976  }
  0x14   :  { %324 = vmatprep.subr.mxu1 %v396_v19  ;;  %320 = vmatpush3.msra.mxu0 %v35_v0  ;;  %34 = vst.msk [vmem:[#allocation4] sm:$0x3] %vm33_vm6, %v396_v19  ;;  %p374_p8 = por %p373_p7, %p372_p6 }
  0x15   :  { %325 = vmatpush3.msra.mxu1 %v36_v2  ;;  %321 = vmatprep.mubr.msk.f32.mxu0 %vm397_vm4, %v396_v19 }
  0x16   :  { %51 = vadd.xlane.f32.xlu0 %v50_v6  ;;  %326 = vmatprep.mubr.msk.f32.mxu1 %vm397_vm4, %v396_v19  ;;  %p375_p9 = pnand %p374_p8, %p368_p5 }
  0x17   :  { %v53_v20 = vld [vmem:[#allocation2] sm:$0x3] }
  0x19   :  { %v97_v43 = vld [vmem:[#allocation3] sm:$0x3] }
  0x1b   :  { %v268_v55 = vld [vmem:[#allocation4] sm:$0x3] }
  0x9b   :  { %v49_v11 = vpop.xlane.xlu0 %48 }
  0x9c   :  { %v61_v14 = vrot.slane %v49_v11, %v60_v12 }
  0x9f   :  { %v52_v13 = vpop.xlane.xlu0 %51 }
  0xa0   :  { %v65_v15 = vrot.slane %v52_v13, %v60_v12 }
  0xa2   :  { %v67_v16 = vsel %vm66_vm2, %v65_v15, %v61_v14 }
  0xa3   :  { %v70_v17 = vsel %vm69_vm3, %v67_v16, -inf }
  0xa4   :  { %71 = vmax.xlane.f32.xlu1 %v70_v17 }
 0x12d   :  { %v72_v21 = vpop.xlane.xlu1 %71 }
 0x12e   :  { %v73_v22 = vmax.f32 %v53_v20, %v72_v21 }
 0x130   :  { %v74_v23 = vsub.f32 %v53_v20, %v73_v22  ;;  %283 = vst.msk [vmem:[#allocation2] sm:$0x3] %vm30_vm1, %v73_v22  ;;  %79 = vperm.xlu1 %337, %v73_v22  }
 0x132   :  { %v75_v41 = vmul.f32 1.442695, %v74_v23 }
 0x1ab   :  { %v80_v26 = vpop.permute.xlu1 %79 }
 0x1ac   :  { %v84_v27 = vrot.slane %v80_v26, %v83_v24  ;;  %v88_v28 = vrot.slane %v80_v26, %v87_v25 }
 0x1ae   :  { %v91_v29 = vsub.f32 %v49_v11, %v84_v27  ;;  %v92_v30 = vsub.f32 %v52_v13, %v88_v28 }
 0x1b0   :  { %v93_v31 = vmul.f32 1.442695, %v91_v29  ;;  %v95_v32 = vmul.f32 1.442695, %v92_v30 }
 0x1b2   :  { %339 = vpow2.f32 %v93_v31 }
 0x1b3   :  { %341 = vpow2.f32 %v95_v32 }
 0x1b4   :  { %343 = vpow2.f32 %v75_v41 }
 0x1bf   :  { %v340_v33 = vpop.eup %339 }
 0x1c0   :  { %v342_v34 = vpop.eup %341  ;;  %102 = vperm.xlu1 %337, %v340_v33  }
 0x1c1   :  { %105 = vperm.xlu0 %338, %v342_v34   ;;  %v344_v42 = vpop.eup %343 }
 0x1c2   :  { %v98_v44 = vmul.f32 %v344_v42, %v97_v43 }
 0x23b   :  { %v103_v35 = vpop.permute.xlu1 %102 }
 0x23c   :  { %v106_v36 = vpop.permute.xlu0 %105  ;;  %v110_v37 = vrot.slane %v103_v35, %v60_v12 }
 0x23d   :  { %v114_v38 = vrot.slane %v106_v36, %v60_v12 }
 0x23e   :  { %322 = vmatmul.mubr.msk.f32.vlgmr.msra.gmra.mxu0 %vm123_vm5, %v110_v37 }
 0x23f   :  { %327 = vmatmul.mubr.msk.f32.vlgmr.msra.gmra.mxu1 %vm123_vm5, %v114_v38  ;;  %v115_v39 = vsel %vm66_vm2, %v114_v38, %v110_v37 }
 0x240   :  { %v117_v40 = vsel %vm69_vm3, %v115_v39, 0.0 }
 0x241   :  { %118 = vadd.xlane.f32.xlu1 %v117_v40 }
 0x2ca   :  { %v119_v45 = vpop.xlane.xlu1 %118 }
 0x2cb   :  { %v120_v46 = vadd.f32 %v119_v45, %v98_v44 }
 0x2cd   :  { %122 = vst.msk [vmem:[#allocation3] sm:$0x3] %vm30_vm1, %v120_v46 }
 0x2d4   :  { %v288_v47 = vld [vmem:[#allocation3] sm:$0x3] }
 0x2d5   :  { %291 = vperm.xlu0 %338, %v288_v47  }
 0x2d9   :  { %271 = vperm.xlu0 %338, %v344_v42  }
 0x2fe   :  { %v192_v48 = vpop.f32.mrf.mxu0 }
 0x2ff   :  { %v264_v49 = vpop.f32.mrf.mxu1 }
 0x300   :  { %v277_v50 = vrot.slane %v264_v49, 7  ;;  %v323_v51 = vpop.f32.mrf.mxu0 }
 0x301   :  { %v328_v52 = vpop.f32.mrf.mxu1 }
 0x302   :  { %v278_v53 = vsel %vm66_vm2, %v277_v50, %v192_v48 }
 0x350   :  { %v292_v54 = vpop.permute.xlu0 %291 }
 0x351   :  { %345 = vrcp.f32 %v292_v54 }
 0x354   :  { %v272_v56 = vpop.permute.xlu0 %271 }
 0x355   :  { %v274_v57 = vmul.f32 %v272_v56, %v268_v55 }
 0x357   :  { %v280_v58 = vadd.f32 %v278_v53, %v274_v57 }
 0x359   :  { %282 = vst.msk [vmem:[#allocation4] sm:$0x3] %vm33_vm6, %v280_v58 }
 0x35e   :  { %v346_v59 = vpop.eup %345 }
 0x360   :  { %v287_v60 = vld [vmem:[#allocation4] sm:$0x3] }
 0x361   :  { %v295_v61 = vmul.f32 %v346_v59, %v287_v60 }
 0x363   :  { %296 = vst.msk [vmem:[#allocation8] sm:$0x3] %vm33_vm6, %v295_v61 }
 0x364   :  { %378 = shalt.err (!%p375_p9)
}
 0x365   :  { %306 = dma.vmem_to_hbm [thread:$0]  %s304_s1, 32, %s437_s2, [#allocation7]  }
 0x366   :  { %389 = dma.done.wait [#allocation7], 32  }
 0x367   :  { %390 = vsyncadd [#allocation7], 4294967264 }
 0x368   :  { %310 = vsyncpa [#allocation6], 1 }
 0x369   :  { %311 = vsyncpa [#allocation7], 1 }

</bundles_post_ra>
